<compile_context>
chip_gen: v6e
topology: v6e:2x2x1
jax: 0.10.0
libtpu: 0.0.40
codegen_flags: <defaults>
</compile_context>

<pallas_src>
import functools

import jax
import jax.numpy as jnp
from jax.experimental import pallas as pl
from jax.experimental.pallas import tpu as pltpu

LN_EPS = 1e-5  # PyTorch nn.LayerNorm default


def _round_up(a, b):
    return (a + b - 1) // b * b


def _detection_head_kernel(
    x_ref,
    # fused first layer (cls | box)
    w1_ref, b1_ref,
    # cls head params
    cg_ref, cbe_ref, cw2_ref, cb2_ref,
    # box head params
    bg_ref, bbe_ref, bw2_ref, bb2_ref, bw3_ref, bb3_ref,
    # fused output [TM, C1 + 4]
    out_ref,
    *, hidden_dim, num_cls_out, compute_dtype,
):
    H = hidden_dim
    C1 = num_cls_out
    inv_h = 1.0 / float(H)

    x = x_ref[...].astype(compute_dtype)  # [TM, D] -> bf16 for the MXU

    # ---- fused first layer: one [D, 2H] MXU pass feeds both heads ----
    y = jnp.dot(x, w1_ref[...], preferred_element_type=jnp.float32)
    y = jnp.maximum(y + b1_ref[...], 0.0)        # [TM, 2H] f32
    h = y[:, :H]   # classification branch
    g = y[:, H:]   # box branch

    def layernorm(v, gamma, beta):
        # one-pass mean / variance: var = E[v^2] - mu^2
        s1 = jnp.sum(v, axis=-1, keepdims=True)
        s2 = jnp.sum(v * v, axis=-1, keepdims=True)
        mu = s1 * inv_h
        var = jnp.maximum(s2 * inv_h - mu * mu, 0.0)
        return (v - mu) * jax.lax.rsqrt(var + LN_EPS) * gamma + beta

    # ---- classification head: (ReLU done) -> LayerNorm -> Linear ----
    h = layernorm(h, cg_ref[...], cbe_ref[...])
    cls = jnp.dot(h.astype(compute_dtype), cw2_ref[...],
                  preferred_element_type=jnp.float32) + cb2_ref[...]

    # ---- box head: (ReLU done) -> LayerNorm -> Linear -> ReLU -> Linear -> Sigmoid ----
    g = layernorm(g, bg_ref[...], bbe_ref[...])
    g = jnp.dot(g.astype(compute_dtype), bw2_ref[...],
                preferred_element_type=jnp.float32) + bb2_ref[...]
    g = jnp.maximum(g, 0.0)
    box = jnp.dot(g.astype(compute_dtype), bw3_ref[...],
                  preferred_element_type=jnp.float32) + bb3_ref[...]
    box = jax.nn.sigmoid(box)

    # Single fused output block: [ cls | box ].
    out_ref[:, :C1] = cls.astype(out_ref.dtype)
    out_ref[:, C1:C1 + 4] = box.astype(out_ref.dtype)


def detection_head_forward(x, params, *, row_tile=256, compute_dtype=jnp.bfloat16):
    """x: [B, Seq, D] -> (class_logits [B, Seq, C+1], box_preds [B, Seq, 4])."""
    B, S, D = x.shape
    M = B * S
    H = params["cls_w1"].shape[1]
    C1 = params["cls_w2"].shape[1]       # num_classes + 1
    out_w = C1 + 4

    # Rows per grid step: multiple of 8 (f32 sublanes), no bigger than needed.
    tm = _round_up(min(row_tile, _round_up(M, 8)), 8)
    M_pad = _round_up(M, tm)

    x2d = x.reshape(M, D).astype(jnp.float32)
    if M_pad != M:
        x2d = jnp.pad(x2d, ((0, M_pad - M), (0, 0)))

    cd = compute_dtype
    # Fuse the two first-layer projections into one [D, 2H] weight.
    w1 = jnp.concatenate([params["cls_w1"], params["box_w1"]], axis=1).astype(cd)
    b1 = jnp.concatenate([params["cls_b1"], params["box_b1"]], axis=1).astype(jnp.float32)

    weights = (
        w1, b1,
        params["cls_gamma"].astype(jnp.float32), params["cls_beta"].astype(jnp.float32),
        params["cls_w2"].astype(cd), params["cls_b2"].astype(jnp.float32),
        params["box_gamma"].astype(jnp.float32), params["box_beta"].astype(jnp.float32),
        params["box_w2"].astype(cd), params["box_b2"].astype(jnp.float32),
        params["box_w3"].astype(cd), params["box_b3"].astype(jnp.float32),
    )

    def full_spec(a):
        # Whole array resident in VMEM, same block every grid step.
        return pl.BlockSpec(a.shape, lambda i: (0,) * a.ndim)

    grid = (M_pad // tm,)

    kernel = functools.partial(
        _detection_head_kernel,
        hidden_dim=H, num_cls_out=C1, compute_dtype=cd,
    )

    out2d = pl.pallas_call(
        kernel,
        out_shape=jax.ShapeDtypeStruct((M_pad, out_w), jnp.float32),
        grid_spec=pltpu.PrefetchScalarGridSpec(
            num_scalar_prefetch=0,
            grid=grid,
            in_specs=[pl.BlockSpec((tm, D), lambda i: (i, 0))]
                     + [full_spec(w) for w in weights],
            out_specs=pl.BlockSpec((tm, out_w), lambda i: (i, 0)),
        ),
        compiler_params=pltpu.CompilerParams(
            dimension_semantics=("parallel",),   # row axis shards across TCs on v7x
        ),
    )(x2d, *weights)

    out2d = out2d[:M]
    cls = out2d[:, :C1].reshape(B, S, C1)
    box = out2d[:, C1:].reshape(B, S, 4)
    return cls, box


def init_params(key, input_dim, num_classes, hidden_dim):
    """Deterministic synthetic init. Linear weights stored as [in, out] (i.e. W.T)."""
    ks = jax.random.split(key, 8)
    scale = lambda fan_in: 1.0 / jnp.sqrt(fan_in)
    p = {
        # cls head
        "cls_w1": jax.random.normal(ks[0], (input_dim, hidden_dim), jnp.float32) * scale(input_dim),
        "cls_b1": jnp.zeros((1, hidden_dim), jnp.float32),
        "cls_gamma": jnp.ones((1, hidden_dim), jnp.float32),
        "cls_beta": jnp.zeros((1, hidden_dim), jnp.float32),
        "cls_w2": jax.random.normal(ks[1], (hidden_dim, num_classes + 1), jnp.float32) * scale(hidden_dim),
        "cls_b2": jnp.zeros((1, num_classes + 1), jnp.float32),
        # box head
        "box_w1": jax.random.normal(ks[2], (input_dim, hidden_dim), jnp.float32) * scale(input_dim),
        "box_b1": jnp.zeros((1, hidden_dim), jnp.float32),
        "box_gamma": jnp.ones((1, hidden_dim), jnp.float32),
        "box_beta": jnp.zeros((1, hidden_dim), jnp.float32),
        "box_w2": jax.random.normal(ks[3], (hidden_dim, hidden_dim), jnp.float32) * scale(hidden_dim),
        "box_b2": jnp.zeros((1, hidden_dim), jnp.float32),
        "box_w3": jax.random.normal(ks[4], (hidden_dim, 4), jnp.float32) * scale(hidden_dim),
        "box_b3": jnp.zeros((1, 4), jnp.float32),
    }
    return p


def reference_forward(x, p, compute_dtype=jnp.float32):
    """Pure-JAX reference matching the PyTorch module. compute_dtype controls the
    matmul input precision (use bf16 to mirror the kernel's MXU feed)."""
    cd = compute_dtype

    def ln(h, g, b):
        mu = jnp.mean(h, axis=-1, keepdims=True)
        var = jnp.mean((h - mu) ** 2, axis=-1, keepdims=True)
        return (h - mu) / jnp.sqrt(var + LN_EPS) * g + b

    def lin(a, w, b):
        return jnp.dot(a.astype(cd), w.astype(cd),
                       preferred_element_type=jnp.float32) + b

    h = jnp.maximum(lin(x, p["cls_w1"], p["cls_b1"]), 0.0)
    h = ln(h, p["cls_gamma"], p["cls_beta"])
    cls = lin(h, p["cls_w2"], p["cls_b2"])

    g = jnp.maximum(lin(x, p["box_w1"], p["box_b1"]), 0.0)
    g = ln(g, p["box_gamma"], p["box_beta"])
    g = jnp.maximum(lin(g, p["box_w2"], p["box_b2"]), 0.0)
    box = jax.nn.sigmoid(lin(g, p["box_w3"], p["box_b3"]))
    return cls, box


if __name__ == "__main__":
    B, SEQ, INPUT_DIM, HIDDEN, NUM_CLASSES = 2, 8, 32, 32, 7

    key = jax.random.PRNGKey(0)
    kx, kp = jax.random.split(key)
    x = jax.random.normal(kx, (B, SEQ, INPUT_DIM), jnp.float32)
    params = init_params(kp, INPUT_DIM, NUM_CLASSES, HIDDEN)

    fwd = jax.jit(functools.partial(detection_head_forward, row_tile=256))
    cls_logits, box_preds = fwd(x, params)
    jax.block_until_ready((cls_logits, box_preds))

    assert cls_logits.shape == (B, SEQ, NUM_CLASSES + 1)
    assert box_preds.shape == (B, SEQ, 4)

    # Reference with the same bf16 MXU input precision as the kernel: tight check.
    ref_cls_m, ref_box_m = reference_forward(x, params, compute_dtype=jnp.bfloat16)
    assert jnp.allclose(cls_logits, ref_cls_m, atol=5e-3, rtol=5e-3)
    assert jnp.allclose(box_preds, ref_box_m, atol=5e-3, rtol=5e-3)

    # Full-f32 reference: loose check (kernel feeds the MXU bf16 by design).
    ref_cls, ref_box = reference_forward(x, params)
    assert jnp.allclose(cls_logits, ref_cls, atol=1e-1, rtol=1e-1)
    assert jnp.allclose(box_preds, ref_box, atol=1e-1, rtol=1e-1)

    print("KERNEL_OK")
</pallas_src>

<mosaic_0001>
module attributes {stable_mosaic.version = 11 : i64} {
  func.func @_detection_head_kernel(%arg0: i32, %arg1: memref<16x32xf32, #tpu.memory_space<vmem>>, %arg2: memref<32x64xbf16, #tpu.memory_space<vmem>>, %arg3: memref<1x64xf32, #tpu.memory_space<vmem>>, %arg4: memref<1x32xf32, #tpu.memory_space<vmem>>, %arg5: memref<1x32xf32, #tpu.memory_space<vmem>>, %arg6: memref<32x8xbf16, #tpu.memory_space<vmem>>, %arg7: memref<1x8xf32, #tpu.memory_space<vmem>>, %arg8: memref<1x32xf32, #tpu.memory_space<vmem>>, %arg9: memref<1x32xf32, #tpu.memory_space<vmem>>, %arg10: memref<32x32xbf16, #tpu.memory_space<vmem>>, %arg11: memref<1x32xf32, #tpu.memory_space<vmem>>, %arg12: memref<32x4xbf16, #tpu.memory_space<vmem>>, %arg13: memref<1x4xf32, #tpu.memory_space<vmem>>, %arg14: memref<16x12xf32, #tpu.memory_space<vmem>>) attributes {dimension_semantics = [#tpu.dimension_semantics<parallel>], iteration_bounds = array<i64: 1>, scalar_prefetch = 0 : i64, scratch_operands = 0 : i64, tpu.core_type = #tpu.core_type<tc>, window_params = [{transform_indices = @transform_0, window_bounds = array<i64: 16, 32>}, {pipeline_mode = #tpu.pipeline_mode<synchronous>, transform_indices = @transform_1, window_bounds = array<i64: 32, 64>}, {pipeline_mode = #tpu.pipeline_mode<synchronous>, transform_indices = @transform_2, window_bounds = array<i64: 1, 64>}, {pipeline_mode = #tpu.pipeline_mode<synchronous>, transform_indices = @transform_3, window_bounds = array<i64: 1, 32>}, {pipeline_mode = #tpu.pipeline_mode<synchronous>, transform_indices = @transform_4, window_bounds = array<i64: 1, 32>}, {pipeline_mode = #tpu.pipeline_mode<synchronous>, transform_indices = @transform_5, window_bounds = array<i64: 32, 8>}, {pipeline_mode = #tpu.pipeline_mode<synchronous>, transform_indices = @transform_6, window_bounds = array<i64: 1, 8>}, {pipeline_mode = #tpu.pipeline_mode<synchronous>, transform_indices = @transform_7, window_bounds = array<i64: 1, 32>}, {pipeline_mode = #tpu.pipeline_mode<synchronous>, transform_indices = @transform_8, window_bounds = array<i64: 1, 32>}, {pipeline_mode = #tpu.pipeline_mode<synchronous>, transform_indices = @transform_9, window_bounds = array<i64: 32, 32>}, {pipeline_mode = #tpu.pipeline_mode<synchronous>, transform_indices = @transform_10, window_bounds = array<i64: 1, 32>}, {pipeline_mode = #tpu.pipeline_mode<synchronous>, transform_indices = @transform_11, window_bounds = array<i64: 32, 4>}, {pipeline_mode = #tpu.pipeline_mode<synchronous>, transform_indices = @transform_12, window_bounds = array<i64: 1, 4>}, {transform_indices = @transform_13, window_bounds = array<i64: 16, 12>}]} {
    %c0 = arith.constant 0 : index
    %c0_0 = arith.constant 0 : index
    %0 = vector.load %arg1[%c0, %c0_0] : memref<16x32xf32, #tpu.memory_space<vmem>>, vector<16x32xf32>
    %1 = arith.truncf %0 : vector<16x32xf32> to vector<16x32xbf16>
    %c0_1 = arith.constant 0 : index
    %c0_2 = arith.constant 0 : index
    %2 = vector.load %arg2[%c0_1, %c0_2] : memref<32x64xbf16, #tpu.memory_space<vmem>>, vector<32x64xbf16>
    %cst = arith.constant dense<0.000000e+00> : vector<16x64xf32>
    %3 = tpu.matmul %1, %2, %cst {dimension_numbers = #tpu.dot_dimension_numbers<[1], [0], [0], [1], [0, 0, 1, 1], [], []>} : vector<16x32xbf16>, vector<32x64xbf16>, vector<16x64xf32> -> vector<16x64xf32>
    %c0_3 = arith.constant 0 : index
    %c0_4 = arith.constant 0 : index
    %4 = vector.load %arg3[%c0_3, %c0_4] : memref<1x64xf32, #tpu.memory_space<vmem>>, vector<1x64xf32>
    %5 = vector.broadcast %4 : vector<1x64xf32> to vector<16x64xf32>
    %6 = arith.addf %3, %5 : vector<16x64xf32>
    %cst_5 = arith.constant 0.000000e+00 : f32
    %7 = vector.broadcast %cst_5 : f32 to vector<16x64xf32>
    %8 = arith.maximumf %6, %7 : vector<16x64xf32>
    %9 = vector.extract_strided_slice %8 {offsets = [0, 0], sizes = [16, 32], strides = [1, 1]} : vector<16x64xf32> to vector<16x32xf32>
    %10 = vector.extract_strided_slice %8 {offsets = [0, 32], sizes = [16, 32], strides = [1, 1]} : vector<16x64xf32> to vector<16x32xf32>
    %c0_6 = arith.constant 0 : index
    %c0_7 = arith.constant 0 : index
    %11 = vector.load %arg4[%c0_6, %c0_7] : memref<1x32xf32, #tpu.memory_space<vmem>>, vector<1x32xf32>
    %c0_8 = arith.constant 0 : index
    %c0_9 = arith.constant 0 : index
    %12 = vector.load %arg5[%c0_8, %c0_9] : memref<1x32xf32, #tpu.memory_space<vmem>>, vector<1x32xf32>
    %cst_10 = arith.constant dense<0.000000e+00> : vector<16xf32>
    %13 = vector.multi_reduction <add>, %9, %cst_10 [1] : vector<16x32xf32> to vector<16xf32>
    %14 = vector.shape_cast %13 : vector<16xf32> to vector<16x1xf32>
    %15 = arith.mulf %9, %9 : vector<16x32xf32>
    %cst_11 = arith.constant dense<0.000000e+00> : vector<16xf32>
    %16 = vector.multi_reduction <add>, %15, %cst_11 [1] : vector<16x32xf32> to vector<16xf32>
    %17 = vector.shape_cast %16 : vector<16xf32> to vector<16x1xf32>
    %cst_12 = arith.constant 3.125000e-02 : f32
    %18 = vector.broadcast %cst_12 : f32 to vector<16x1xf32>
    %19 = arith.mulf %14, %18 : vector<16x1xf32>
    %cst_13 = arith.constant 3.125000e-02 : f32
    %20 = vector.broadcast %cst_13 : f32 to vector<16x1xf32>
    %21 = arith.mulf %17, %20 : vector<16x1xf32>
    %22 = arith.mulf %19, %19 : vector<16x1xf32>
    %23 = arith.subf %21, %22 : vector<16x1xf32>
    %cst_14 = arith.constant 0.000000e+00 : f32
    %24 = vector.broadcast %cst_14 : f32 to vector<16x1xf32>
    %25 = arith.maximumf %23, %24 : vector<16x1xf32>
    %26 = vector.broadcast %19 : vector<16x1xf32> to vector<16x32xf32>
    %27 = arith.subf %9, %26 : vector<16x32xf32>
    %cst_15 = arith.constant 9.99999974E-6 : f32
    %28 = vector.broadcast %cst_15 : f32 to vector<16x1xf32>
    %29 = arith.addf %25, %28 : vector<16x1xf32>
    %30 = math.rsqrt %29 : vector<16x1xf32>
    %31 = vector.broadcast %30 : vector<16x1xf32> to vector<16x32xf32>
    %32 = arith.mulf %27, %31 : vector<16x32xf32>
    %33 = vector.broadcast %11 : vector<1x32xf32> to vector<16x32xf32>
    %34 = arith.mulf %32, %33 : vector<16x32xf32>
    %35 = vector.broadcast %12 : vector<1x32xf32> to vector<16x32xf32>
    %36 = arith.addf %34, %35 : vector<16x32xf32>
    %37 = arith.truncf %36 : vector<16x32xf32> to vector<16x32xbf16>
    %c0_16 = arith.constant 0 : index
    %c0_17 = arith.constant 0 : index
    %38 = vector.load %arg6[%c0_16, %c0_17] : memref<32x8xbf16, #tpu.memory_space<vmem>>, vector<32x8xbf16>
    %cst_18 = arith.constant dense<0.000000e+00> : vector<16x8xf32>
    %39 = tpu.matmul %37, %38, %cst_18 {dimension_numbers = #tpu.dot_dimension_numbers<[1], [0], [0], [1], [0, 0, 1, 1], [], []>} : vector<16x32xbf16>, vector<32x8xbf16>, vector<16x8xf32> -> vector<16x8xf32>
    %c0_19 = arith.constant 0 : index
    %c0_20 = arith.constant 0 : index
    %40 = vector.load %arg7[%c0_19, %c0_20] : memref<1x8xf32, #tpu.memory_space<vmem>>, vector<1x8xf32>
    %41 = vector.broadcast %40 : vector<1x8xf32> to vector<16x8xf32>
    %42 = arith.addf %39, %41 : vector<16x8xf32>
    %c0_21 = arith.constant 0 : index
    %c0_22 = arith.constant 0 : index
    %43 = vector.load %arg8[%c0_21, %c0_22] : memref<1x32xf32, #tpu.memory_space<vmem>>, vector<1x32xf32>
    %c0_23 = arith.constant 0 : index
    %c0_24 = arith.constant 0 : index
    %44 = vector.load %arg9[%c0_23, %c0_24] : memref<1x32xf32, #tpu.memory_space<vmem>>, vector<1x32xf32>
    %cst_25 = arith.constant dense<0.000000e+00> : vector<16xf32>
    %45 = vector.multi_reduction <add>, %10, %cst_25 [1] : vector<16x32xf32> to vector<16xf32>
    %46 = vector.shape_cast %45 : vector<16xf32> to vector<16x1xf32>
    %47 = arith.mulf %10, %10 : vector<16x32xf32>
    %cst_26 = arith.constant dense<0.000000e+00> : vector<16xf32>
    %48 = vector.multi_reduction <add>, %47, %cst_26 [1] : vector<16x32xf32> to vector<16xf32>
    %49 = vector.shape_cast %48 : vector<16xf32> to vector<16x1xf32>
    %cst_27 = arith.constant 3.125000e-02 : f32
    %50 = vector.broadcast %cst_27 : f32 to vector<16x1xf32>
    %51 = arith.mulf %46, %50 : vector<16x1xf32>
    %cst_28 = arith.constant 3.125000e-02 : f32
    %52 = vector.broadcast %cst_28 : f32 to vector<16x1xf32>
    %53 = arith.mulf %49, %52 : vector<16x1xf32>
    %54 = arith.mulf %51, %51 : vector<16x1xf32>
    %55 = arith.subf %53, %54 : vector<16x1xf32>
    %cst_29 = arith.constant 0.000000e+00 : f32
    %56 = vector.broadcast %cst_29 : f32 to vector<16x1xf32>
    %57 = arith.maximumf %55, %56 : vector<16x1xf32>
    %58 = vector.broadcast %51 : vector<16x1xf32> to vector<16x32xf32>
    %59 = arith.subf %10, %58 : vector<16x32xf32>
    %cst_30 = arith.constant 9.99999974E-6 : f32
    %60 = vector.broadcast %cst_30 : f32 to vector<16x1xf32>
    %61 = arith.addf %57, %60 : vector<16x1xf32>
    %62 = math.rsqrt %61 : vector<16x1xf32>
    %63 = vector.broadcast %62 : vector<16x1xf32> to vector<16x32xf32>
    %64 = arith.mulf %59, %63 : vector<16x32xf32>
    %65 = vector.broadcast %43 : vector<1x32xf32> to vector<16x32xf32>
    %66 = arith.mulf %64, %65 : vector<16x32xf32>
    %67 = vector.broadcast %44 : vector<1x32xf32> to vector<16x32xf32>
    %68 = arith.addf %66, %67 : vector<16x32xf32>
    %69 = arith.truncf %68 : vector<16x32xf32> to vector<16x32xbf16>
    %c0_31 = arith.constant 0 : index
    %c0_32 = arith.constant 0 : index
    %70 = vector.load %arg10[%c0_31, %c0_32] : memref<32x32xbf16, #tpu.memory_space<vmem>>, vector<32x32xbf16>
    %cst_33 = arith.constant dense<0.000000e+00> : vector<16x32xf32>
    %71 = tpu.matmul %69, %70, %cst_33 {dimension_numbers = #tpu.dot_dimension_numbers<[1], [0], [0], [1], [0, 0, 1, 1], [], []>} : vector<16x32xbf16>, vector<32x32xbf16>, vector<16x32xf32> -> vector<16x32xf32>
    %c0_34 = arith.constant 0 : index
    %c0_35 = arith.constant 0 : index
    %72 = vector.load %arg11[%c0_34, %c0_35] : memref<1x32xf32, #tpu.memory_space<vmem>>, vector<1x32xf32>
    %73 = vector.broadcast %72 : vector<1x32xf32> to vector<16x32xf32>
    %74 = arith.addf %71, %73 : vector<16x32xf32>
    %cst_36 = arith.constant 0.000000e+00 : f32
    %75 = vector.broadcast %cst_36 : f32 to vector<16x32xf32>
    %76 = arith.maximumf %74, %75 : vector<16x32xf32>
    %77 = arith.truncf %76 : vector<16x32xf32> to vector<16x32xbf16>
    %c0_37 = arith.constant 0 : index
    %c0_38 = arith.constant 0 : index
    %78 = vector.load %arg12[%c0_37, %c0_38] : memref<32x4xbf16, #tpu.memory_space<vmem>>, vector<32x4xbf16>
    %cst_39 = arith.constant dense<0.000000e+00> : vector<16x4xf32>
    %79 = tpu.matmul %77, %78, %cst_39 {dimension_numbers = #tpu.dot_dimension_numbers<[1], [0], [0], [1], [0, 0, 1, 1], [], []>} : vector<16x32xbf16>, vector<32x4xbf16>, vector<16x4xf32> -> vector<16x4xf32>
    %c0_40 = arith.constant 0 : index
    %c0_41 = arith.constant 0 : index
    %80 = vector.load %arg13[%c0_40, %c0_41] : memref<1x4xf32, #tpu.memory_space<vmem>>, vector<1x4xf32>
    %81 = vector.broadcast %80 : vector<1x4xf32> to vector<16x4xf32>
    %82 = arith.addf %79, %81 : vector<16x4xf32>
    %83 = arith.negf %82 : vector<16x4xf32>
    %84 = math.exp %83 : vector<16x4xf32>
    %cst_42 = arith.constant 1.000000e+00 : f32
    %85 = vector.broadcast %cst_42 : f32 to vector<16x4xf32>
    %86 = arith.addf %85, %84 : vector<16x4xf32>
    %87 = arith.divf %85, %86 : vector<16x4xf32>
    %c0_43 = arith.constant 0 : index
    %c0_44 = arith.constant 0 : index
    %88 = vector.load %arg14[%c0_43, %c0_44] : memref<16x12xf32, #tpu.memory_space<vmem>>, vector<16x8xf32>
    tpu.vector_store %arg14[%c0_43, %c0_44], %42 {strides = array<i32>} : memref<16x12xf32, #tpu.memory_space<vmem>>, vector<16x8xf32>,
    %c0_45 = arith.constant 0 : index
    %c8 = arith.constant 8 : index
    %89 = vector.load %arg14[%c0_45, %c8] : memref<16x12xf32, #tpu.memory_space<vmem>>, vector<16x4xf32>
    tpu.vector_store %arg14[%c0_45, %c8], %87 {strides = array<i32>} : memref<16x12xf32, #tpu.memory_space<vmem>>, vector<16x4xf32>,
    return
  }
  func.func @transform_0(%arg0: i32) -> (i32, i32) {
    %c0_i32 = arith.constant 0 : i32
    %c0_i32_0 = arith.constant 0 : i32
    return %arg0, %c0_i32 : i32, i32
  }
  func.func @transform_1(%arg0: i32) -> (i32, i32) {
    %c0_i32 = arith.constant 0 : i32
    %c0_i32_0 = arith.constant 0 : i32
    %c0_i32_1 = arith.constant 0 : i32
    return %c0_i32, %c0_i32_0 : i32, i32
  }
  func.func @transform_2(%arg0: i32) -> (i32, i32) {
    %c0_i32 = arith.constant 0 : i32
    %c0_i32_0 = arith.constant 0 : i32
    %c0_i32_1 = arith.constant 0 : i32
    return %c0_i32, %c0_i32_0 : i32, i32
  }
  func.func @transform_3(%arg0: i32) -> (i32, i32) {
    %c0_i32 = arith.constant 0 : i32
    %c0_i32_0 = arith.constant 0 : i32
    %c0_i32_1 = arith.constant 0 : i32
    return %c0_i32, %c0_i32_0 : i32, i32
  }
  func.func @transform_4(%arg0: i32) -> (i32, i32) {
    %c0_i32 = arith.constant 0 : i32
    %c0_i32_0 = arith.constant 0 : i32
    %c0_i32_1 = arith.constant 0 : i32
    return %c0_i32, %c0_i32_0 : i32, i32
  }
  func.func @transform_5(%arg0: i32) -> (i32, i32) {
    %c0_i32 = arith.constant 0 : i32
    %c0_i32_0 = arith.constant 0 : i32
    %c0_i32_1 = arith.constant 0 : i32
    return %c0_i32, %c0_i32_0 : i32, i32
  }
  func.func @transform_6(%arg0: i32) -> (i32, i32) {
    %c0_i32 = arith.constant 0 : i32
    %c0_i32_0 = arith.constant 0 : i32
    %c0_i32_1 = arith.constant 0 : i32
    return %c0_i32, %c0_i32_0 : i32, i32
  }
  func.func @transform_7(%arg0: i32) -> (i32, i32) {
    %c0_i32 = arith.constant 0 : i32
    %c0_i32_0 = arith.constant 0 : i32
    %c0_i32_1 = arith.constant 0 : i32
    return %c0_i32, %c0_i32_0 : i32, i32
  }
  func.func @transform_8(%arg0: i32) -> (i32, i32) {
    %c0_i32 = arith.constant 0 : i32
    %c0_i32_0 = arith.constant 0 : i32
    %c0_i32_1 = arith.constant 0 : i32
    return %c0_i32, %c0_i32_0 : i32, i32
  }
  func.func @transform_9(%arg0: i32) -> (i32, i32) {
    %c0_i32 = arith.constant 0 : i32
    %c0_i32_0 = arith.constant 0 : i32
    %c0_i32_1 = arith.constant 0 : i32
    return %c0_i32, %c0_i32_0 : i32, i32
  }
  func.func @transform_10(%arg0: i32) -> (i32, i32) {
    %c0_i32 = arith.constant 0 : i32
    %c0_i32_0 = arith.constant 0 : i32
    %c0_i32_1 = arith.constant 0 : i32
    return %c0_i32, %c0_i32_0 : i32, i32
  }
  func.func @transform_11(%arg0: i32) -> (i32, i32) {
    %c0_i32 = arith.constant 0 : i32
    %c0_i32_0 = arith.constant 0 : i32
    %c0_i32_1 = arith.constant 0 : i32
    return %c0_i32, %c0_i32_0 : i32, i32
  }
  func.func @transform_12(%arg0: i32) -> (i32, i32) {
    %c0_i32 = arith.constant 0 : i32
    %c0_i32_0 = arith.constant 0 : i32
    %c0_i32_1 = arith.constant 0 : i32
    return %c0_i32, %c0_i32_0 : i32, i32
  }
  func.func @transform_13(%arg0: i32) -> (i32, i32) {
    %c0_i32 = arith.constant 0 : i32
    %c0_i32_0 = arith.constant 0 : i32
    return %arg0, %c0_i32 : i32, i32
  }
}

</mosaic_0001>

<bundles_post_ra>
// kernel: detection_head_forward.1
= control target key start
LH: loop header
LB: loop body
LE: loop exit
PB: predicated region body
PF: predicated region fallthrough
CT: control target
= control target key end

     0   :  { %v570_v0 = vmov 0.0   ;;  %vm571_vm0 = vmmov 0   ;;  %vm71_vm1 = vcmask 261120   ;;  %s573_s18 = smov 32   ;;  %vm457_vm2 = vcmask 64512   ;;  %s764_s1 = inlined_call_operand.vmem [shape: bf16[32,64], index: 1, kind: input, shape index: {}]   ;;  %s765_s0 = inlined_call_operand.vmem [shape: f32[16,32], index: 0, kind: input, shape index: {}]   ;;  %s766_s2 = inlined_call_operand.vmem [shape: f32[1,64], index: 2, kind: input, shape index: {}]   ;;  %s767_s7 = inlined_call_operand.vmem [shape: f32[1,32], index: 7, kind: input, shape index: {}]   ;;  %s768_s8 = inlined_call_operand.vmem [shape: f32[1,32], index: 8, kind: input, shape index: {}]   ;;  %s769_s9 = inlined_call_operand.vmem [shape: bf16[32,32], index: 9, kind: input, shape index: {}]   ;;  %s770_s5 = inlined_call_operand.vmem [shape: bf16[32,8], index: 5, kind: input, shape index: {}]   ;;  %s771_s11 = inlined_call_operand.vmem [shape: bf16[32,4], index: 11, kind: input, shape index: {}]   ;;  %s772_s3 = inlined_call_operand.vmem [shape: f32[1,32], index: 3, kind: input, shape index: {}]   ;;  %s773_s4 = inlined_call_operand.vmem [shape: f32[1,32], index: 4, kind: input, shape index: {}]   ;;  %s774_s10 = inlined_call_operand.vmem [shape: f32[1,32], index: 10, kind: input, shape index: {}]   ;;  %s775_s6 = inlined_call_operand.vmem [shape: f32[1,8], index: 6, kind: input, shape index: {}]   ;;  %s776_s13 = inlined_call_operand.vmem [shape: f32[16,12], index: 13, kind: output, shape index: {}]   ;;  %s777_s12 = inlined_call_operand.vmem [shape: f32[1,4], index: 12, kind: input, shape index: {}]  }
   0x1   :  { %509 = vmatprep.subr.bf16.mxu0 %v570_v0  ;;  %v546_v1 = vld [vmem:[%s764_s1 + $0x8] sm:$0xff]   ;;  %513 = vmatprep.mubr.msk.bf16.mxu0 %vm571_vm0, %v570_v0  ;;  %v547_v2 = vld [vmem:[%s764_s1] sm:$0xff]   ;;  %vm468_vm3 = vcmask 97344  }
   0x2   :  { %517 = vmatprep.subr.bf16.mxu1 %v570_v0  ;;  %521 = vmatprep.mubr.msk.bf16.mxu1 %vm571_vm0, %v570_v0  ;;  %v45_v3 = vld [vmem:[%s765_s0] sm:$0xff]  ;;  %v46_v4 = vld [vmem:[%s765_s0 + $0x8] sm:$0xff]  ;;  %s572_s0 = smov 96  }
   0x3   :  { %510 = vmatpush3.bf16.msra.mxu0 %v546_v1  ;;  %v47_v5 = vpack.c.bf16 %v46_v4, %v45_v3  ;;  %v475_v6 = vld [vmem:[%s766_s2] ss:$0 sm:$0xff]  ;;  %v548_v29 = vld [vmem:[%s769_s9 + $0x8] sm:$0xff]  }
   0x4   :  { %511 = vmatprep.subr.bf16.mxu0 %v570_v0  ;;  %v485_v25 = vld [vmem:[%s767_s7] ss:$0 sm:$0xff]  ;;  %v550_v62 = vld [vmem:[%s770_s5 + $0x8] sm:$0xff]  }
   0x5   :  { %v486_v26 = vld [vmem:[%s768_s8] ss:$0 sm:$0xff]  ;;  %518 = vmatpush3.bf16.msra.mxu1 %v550_v62 }
   0x6   :  { %v549_v30 = vld [vmem:[%s769_s9] sm:$0xff]   ;;  %519 = vmatprep.subr.bf16.mxu1 %v570_v0 }
   0x7   :  { %512 = vmatpush3.bf16.msra.mxu0 %v547_v2  ;;  %v551_v63 = vld [vmem:[%s770_s5] sm:$0xff]  }
   0x8   :  { %525 = vmatprep.subr.bf16.mxu0 %v570_v0 }
   0x9   :  { %520 = vmatpush3.bf16.msra.mxu1 %v551_v63 }
   0xa   :  { %514 = vmatmul.mubr.msk.bf16.vlgmr.msra.gmra.mxu0 %vm71_vm1, %v47_v5  ;;  %533 = vmatprep.subr.bf16.mxu1 %v570_v0 }
   0xb   :  { %529 = vmatprep.mubr.msk.bf16.mxu0 %vm571_vm0, %v570_v0  ;;  %526 = vmatpush3.bf16.msra.mxu0 %v548_v29 }
   0xc   :  { %527 = vmatprep.subr.bf16.mxu0 %v570_v0 }
   0xf   :  { %528 = vmatpush3.bf16.msra.mxu0 %v549_v30 }
  0xca   :  { %v109_v7 = vpop.f32.mrf.mxu0 }
  0xcb   :  { %v110_v8 = vadd.f32 %v475_v6, %v109_v7 }
  0xcc   :  { %v515_v9 = vpop.f32.mrf.mxu0 }
  0xcd   :  { %v671_v10 = vmax.f32 %v110_v8, 0.0 }
  0xce   :  { %v112_v11 = vpop.f32.mrf.mxu0 }
  0xcf   :  { %v113_v12 = vadd.f32 %v475_v6, %v112_v11  ;;  %240 = vrot.lane.b32.xlu0 %v671_v10, %s572_s0  ;;  %v126_v13 = vmul.f32 %v671_v10, %v671_v10  ;;  %v120_v60 = vsel %vm71_vm1, %v671_v10, 0.0 }
  0xd0   :  { %v516_v14 = vpop.f32.mrf.mxu0 }
  0xd1   :  { %v677_v15 = vmax.f32 %v113_v12, 0.0  ;;  %254 = vrot.lane.b32.xlu1 %v126_v13, %s572_s0  ;;  %v128_v28 = vsel %vm71_vm1, %v126_v13, 0.0 }
  0xd3   :  { %242 = vrot.lane.b32.xlu0 %v677_v15, %s572_s0  ;;  %v684_v16 = vmul.f32 %v677_v15, %v677_v15  ;;  %v123_v27 = vsel %vm71_vm1, %v677_v15, 0.0 }
  0xd5   :  { %256 = vrot.lane.b32.xlu1 %v684_v16, %s572_s0  ;;  %v131_v61 = vsel %vm71_vm1, %v684_v16, 0.0 }
 0x141   :  { %v241_v17 = vpop.permute.xlu0 %240 }
 0x142   :  { %v246_v18 = vsel %vm71_vm1, %v241_v17, 0.0 }
 0x143   :  { %v255_v19 = vpop.permute.xlu1 %254  ;;  %247 = vadd.xlane.f32.xlu0 %v246_v18 }
 0x144   :  { %v260_v21 = vsel %vm71_vm1, %v255_v19, 0.0 }
 0x145   :  { %v243_v20 = vpop.permute.xlu0 %242 }
 0x146   :  { %v249_v22 = vsel %vm71_vm1, %v243_v20, 0.0 }
 0x147   :  { %261 = vadd.xlane.f32.xlu0 %v260_v21  ;;  %250 = vadd.xlane.f32.xlu1 %v249_v22  ;;  %v257_v23 = vpop.permute.xlu1 %256  ;;  %v479_v22 = vld [vmem:[%s772_s3] ss:$0 sm:$0xff] }
 0x148   :  { %v263_v24 = vsel %vm71_vm1, %v257_v23, 0.0 }
 0x14b   :  { %264 = vadd.xlane.f32.xlu0 %v263_v24 }
 0x158   :  { %289 = vrot.lane.b32.xlu1 %v485_v25, %s573_s18 }
 0x161   :  { %299 = vrot.lane.b32.xlu0 %v486_v26, %s573_s18 }
 0x180   :  { %124 = vadd.xlane.f32.xlu0 %v123_v27 }
 0x184   :  { %129 = vadd.xlane.f32.xlu0 %v128_v28  ;;  %v480_v28 = vld [vmem:[%s773_s4] ss:$0 sm:$0xff] }
 0x1cc   :  { %v248_v31 = vpop.xlane.xlu0 %247 }
 0x1cd   :  { %v266_v32 = vmul.f32 0.03125, %v248_v31 }
 0x1cf   :  { %v270_v35 = vmul.f32 %v266_v32, %v266_v32  ;;  %v276_v47 = vsub.f32 %v671_v10, %v266_v32 }
 0x1d0   :  { %v262_v33 = vpop.xlane.xlu0 %261  ;;  %v251_v34 = vpop.xlane.xlu1 %250 }
 0x1d1   :  { %v268_v36 = vmul.f32 0.03125, %v262_v33  ;;  %v267_v37 = vmul.f32 0.03125, %v251_v34  ;;  %v487_v33 = vld [vmem:[%s774_s10] ss:$0 sm:$0xff] }
 0x1d3   :  { %v272_v38 = vsub.f32 %v268_v36, %v270_v35  ;;  %v271_v41 = vmul.f32 %v267_v37, %v267_v37  ;;  %v277_v51 = vsub.f32 %v677_v15, %v267_v37 }
 0x1d4   :  { %v265_v39 = vpop.xlane.xlu0 %264  ;;  %v290_v50 = vpop.permute.xlu1 %289 }
 0x1d5   :  { %v274_v40 = vmax.f32 %v272_v38, 0.0  ;;  %v269_v42 = vmul.f32 0.03125, %v265_v39 }
 0x1d7   :  { %v278_v43 = vadd.f32 1e-05, %v274_v40  ;;  %v273_v44 = vsub.f32 %v269_v42, %v271_v41 }
 0x1d8   :  { %v300_v55 = vpop.permute.xlu0 %299 }
 0x1d9   :  { %554 = vrsqrt.f32 %v278_v43  ;;  %v275_v45 = vmax.f32 %v273_v44, 0.0 }
 0x1db   :  { %v279_v46 = vadd.f32 1e-05, %v275_v45 }
 0x1dd   :  { %556 = vrsqrt.f32 %v279_v46 }
 0x1e6   :  { %v555_v48 = vpop.eup %554 }
 0x1e7   :  { %v282_v49 = vmul.f32 %v555_v48, %v276_v47 }
 0x1e9   :  { %v292_v54 = vmul.f32 %v290_v50, %v282_v49  ;;  %v491_v49 = vld [vmem:[%s777_s12] ss:$0 sm:$0xff] }
 0x1ea   :  { %v557_v52 = vpop.eup %556 }
 0x1eb   :  { %v283_v53 = vmul.f32 %v557_v52, %v277_v51  ;;  %v302_v57 = vadd.f32 %v300_v55, %v292_v54 }
 0x1ed   :  { %v293_v56 = vmul.f32 %v290_v50, %v283_v53 }
 0x1ef   :  { %v303_v58 = vadd.f32 %v300_v55, %v293_v56 }
 0x1f1   :  { %v304_v59 = vpack.c.bf16 %v303_v58, %v302_v57 }
 0x1f3   :  { %317 = vrot.lane.b32.xlu1 %v304_v59, %s572_s0 }
 0x209   :  { %v125_v2 = vpop.xlane.xlu0 %124 }
 0x20a   :  { %v135_v5 = vmul.f32 0.03125, %v125_v2 }
 0x20c   :  { %v139_v11 = vmul.f32 %v135_v5, %v135_v5  ;;  %v145_v23 = vsub.f32 %v677_v15, %v135_v5  ;;  %v553_v15 = vld [vmem:[%s771_s11] sm:$0xff]  }
 0x20d   :  { %v130_v3 = vpop.xlane.xlu0 %129 }
 0x20e   :  { %v136_v7 = vmul.f32 0.03125, %v130_v3 }
 0x217   :  { %121 = vadd.xlane.f32.xlu1 %v120_v60 }
 0x21b   :  { %132 = vadd.xlane.f32.xlu1 %v131_v61 }
 0x265   :  { %v318_v1 = vpop.permute.xlu1 %317 }
 0x266   :  { %530 = vmatmul.mubr.msk.bf16.vlgmr.msra.gmra.mxu0 %vm71_vm1, %v318_v1 }
 0x2a0   :  { %v122_v4 = vpop.xlane.xlu1 %121 }
 0x2a1   :  { %v134_v6 = vmul.f32 0.03125, %v122_v4 }
 0x2a3   :  { %v138_v8 = vmul.f32 %v134_v6, %v134_v6  ;;  %v144_v20 = vsub.f32 %v671_v10, %v134_v6  ;;  %v552_v10 = vld [vmem:[%s771_s11 + $0x8] sm:$0xff]  }
 0x2a4   :  { %v133_v9 = vpop.xlane.xlu1 %132 }
 0x2a5   :  { %v140_v12 = vsub.f32 %v136_v7, %v138_v8  ;;  %v137_v13 = vmul.f32 0.03125, %v133_v9 }
 0x2a7   :  { %v142_v14 = vmax.f32 %v140_v12, 0.0  ;;  %v141_v16 = vsub.f32 %v137_v13, %v139_v11 }
 0x2a9   :  { %v146_v17 = vadd.f32 1e-05, %v142_v14  ;;  %v143_v18 = vmax.f32 %v141_v16, 0.0 }
 0x2ab   :  { %558 = vrsqrt.f32 %v146_v17  ;;  %v147_v19 = vadd.f32 1e-05, %v143_v18 }
 0x2ad   :  { %560 = vrsqrt.f32 %v147_v19 }
 0x2b8   :  { %v559_v21 = vpop.eup %558 }
 0x2b9   :  { %v150_v24 = vmul.f32 %v559_v21, %v144_v20 }
 0x2ba   :  { %v561_v25 = vpop.eup %560 }
 0x2bb   :  { %v158_v26 = vmul.f32 %v479_v22, %v150_v24  ;;  %v151_v27 = vmul.f32 %v561_v25, %v145_v23 }
 0x2bd   :  { %v159_v29 = vmul.f32 %v479_v22, %v151_v27  ;;  %v166_v30 = vadd.f32 %v480_v28, %v158_v26 }
 0x2bf   :  { %v167_v31 = vadd.f32 %v480_v28, %v159_v29 }
 0x2c1   :  { %v168_v32 = vpack.c.bf16 %v167_v31, %v166_v30 }
 0x2c3   :  { %522 = vmatmul.mubr.msk.bf16.vlgmr.msra.gmra.mxu1 %vm71_vm1, %v168_v32 }
 0x2c4   :  { %534 = vmatpush3.bf16.msra.mxu1 %v552_v10  ;;  %537 = vmatprep.mubr.msk.bf16.mxu1 %vm571_vm0, %v570_v0 }
 0x2c5   :  { %535 = vmatprep.subr.bf16.mxu1 %v570_v0  ;;  %v481_v0 = vld [vmem:[%s775_s6] ss:$0 sm:$0xff]  ;;  %s574_s6 = smov 8  }
 0x2c8   :  { %536 = vmatpush3.bf16.msra.mxu1 %v553_v15 }
 0x326   :  { %v368_v34 = vpop.f32.mrf.mxu0 }
 0x327   :  { %v369_v36 = vadd.f32 %v487_v33, %v368_v34 }
 0x328   :  { %v531_v35 = vpop.f32.mrf.mxu0 }
 0x329   :  { %v375_v40 = vmax.f32 %v369_v36, 0.0 }
 0x32a   :  { %v371_v37 = vpop.f32.mrf.mxu0 }
 0x32b   :  { %v372_v38 = vadd.f32 %v487_v33, %v371_v37 }
 0x32c   :  { %v532_v39 = vpop.f32.mrf.mxu0 }
 0x32d   :  { %v376_v41 = vmax.f32 %v372_v38, 0.0 }
 0x32f   :  { %v377_v42 = vpack.c.bf16 %v376_v41, %v375_v40 }
 0x331   :  { %538 = vmatmul.mubr.msk.bf16.vlgmr.msra.gmra.mxu1 %vm71_vm1, %v377_v42 }
 0x383   :  { %v229_v43 = vpop.f32.mrf.mxu1 }
 0x384   :  { %v230_v44 = vadd.f32 %v481_v0, %v229_v43 }
 0x385   :  { %v523_v45 = vpop.f32.mrf.mxu1 }
 0x386   :  { %458 = vst.msk [vmem:[%s776_s13] sm:$0xff] %vm457_vm2, %v230_v44 }
 0x387   :  { %v232_v46 = vpop.f32.mrf.mxu1 }
 0x388   :  { %v233_v47 = vadd.f32 %v481_v0, %v232_v46 }
 0x389   :  { %v524_v48 = vpop.f32.mrf.mxu1 }
 0x38a   :  { %459 = vst.msk [vmem:[%s776_s13 + $0x8] sm:$0xff] %vm457_vm2, %v233_v47 }
 0x3f1   :  { %v438_v50 = vpop.f32.mrf.mxu1 }
 0x3f2   :  { %v439_v51 = vadd.f32 %v491_v49, %v438_v50 }
 0x3f3   :  { %v539_v52 = vpop.f32.mrf.mxu1 }
 0x3f4   :  { %v495_v53 = vmul.f32 -1.442695, %v439_v51 }
 0x3f5   :  { %v441_v54 = vpop.f32.mrf.mxu1 }
 0x3f6   :  { %562 = vpow2.f32 %v495_v53  ;;  %v442_v55 = vadd.f32 %v491_v49, %v441_v54 }
 0x3f7   :  { %v540_v56 = vpop.f32.mrf.mxu1 }
 0x3f8   :  { %v496_v57 = vmul.f32 -1.442695, %v442_v55 }
 0x3fa   :  { %564 = vpow2.f32 %v496_v57 }
 0x403   :  { %v563_v58 = vpop.eup %562 }
 0x404   :  { %v451_v59 = vadd.f32 1.0, %v563_v58 }
 0x406   :  { %566 = vrcp.f32 %v451_v59 }
 0x407   :  { %v565_v60 = vpop.eup %564 }
 0x408   :  { %v452_v61 = vadd.f32 1.0, %v565_v60 }
 0x40a   :  { %568 = vrcp.f32 %v452_v61 }
 0x413   :  { %v567_v62 = vpop.eup %566 }
 0x414   :  { %462 = vrot.lane.b32.xlu0 %v567_v62, %s574_s6 }
 0x417   :  { %v569_v63 = vpop.eup %568 }
 0x418   :  { %464 = vrot.lane.b32.xlu1 %v569_v63, %s574_s6 }
 0x486   :  { %v463_v1 = vpop.permute.xlu0 %462 }
 0x487   :  { %469 = vst.msk [vmem:[%s776_s13] sm:$0xff] %vm468_vm3, %v463_v1 }
 0x48a   :  { %v465_v2 = vpop.permute.xlu1 %464 }
 0x48b   :  { %470 = vst.msk [vmem:[%s776_s13 + $0x8] sm:$0xff] %vm468_vm3, %v465_v2 }

</bundles_post_ra>
